<compile_context>
chip_gen: v6e
topology: v6e:2x2x1
jax: 0.10.0
libtpu: 0.0.40
codegen_flags: <defaults>
</compile_context>

<pallas_src>
import functools

import jax
import jax.numpy as jnp
from jax.experimental import pallas as pl
from jax.experimental.pallas import tpu as pltpu


def _round_up(x, m):
    return (x + m - 1) // m * m


def learner_kernel(logits_ref, target_ref, log_alpha_ref, out_ref, ce_acc,
                   *, num_samples, kl_weight, batch_size, tile_n):
    pid = pl.program_id(0)

    @pl.when(pid == 0)
    def _():
        ce_acc[0] = jnp.float32(0.0)

    # ---- partial cross-entropy sum over this batch tile ----
    x = logits_ref[...].astype(jnp.float32)                  # [TILE_N, C]
    t = target_ref[...]                                      # [TILE_N, 1] int32

    m = jnp.max(x, axis=-1, keepdims=True)                   # [TILE_N, 1]
    lse = m + jnp.log(jnp.sum(jnp.exp(x - m), axis=-1, keepdims=True))
    col = jax.lax.broadcasted_iota(jnp.int32, x.shape, 1)    # [TILE_N, C]
    sel = jnp.sum(jnp.where(col == t, x, 0.0), axis=-1, keepdims=True)

    # Mask padded rows (batch was padded up to a multiple of TILE_N).
    row = jax.lax.broadcasted_iota(jnp.int32, (tile_n, 1), 0) + pid * tile_n
    per_row = jnp.where(row < batch_size, lse - sel, 0.0)    # [TILE_N, 1]
    ce_acc[0] += jnp.sum(per_row)

    # ---- finalize on the last tile: KL regularizer + loss/elbo ----
    @pl.when(pid == pl.num_programs(0) - 1)
    def _():
        ce = ce_acc[0] / jnp.float32(batch_size)

        # SVDO kl_reg: -sum(k1*sigmoid(k2 + k3*la) - 0.5*softplus(-la) - k1)
        la = log_alpha_ref[...].astype(jnp.float32)           # [K, D]
        k1, k2, k3 = 0.63576, 1.8732, 1.48695
        kl_el = (k1 * jax.nn.sigmoid(k2 + k3 * la)
                 - 0.5 * jax.nn.softplus(-la)                 # stable for la << 0
                 - k1)
        kl = -jnp.sum(kl_el) / jnp.float32(num_samples)

        out_ref[0, 0] = ce + jnp.float32(kl_weight) * kl      # loss
        out_ref[0, 1] = -ce - kl                              # elbo


def learner_forward(logits, target, log_alpha, *, num_samples, kl_weight=0.1):
    """Returns (cross_entropy + kl_weight*kl, elbo) as float32 scalars."""
    n, c = logits.shape
    k, d = log_alpha.shape

    # Tile the batch; pad up to a multiple of the tile (padded rows are masked).
    tile_n = min(128, _round_up(n, 8))
    n_pad = _round_up(n, tile_n)
    if n_pad != n:
        logits = jnp.pad(logits, ((0, n_pad - n), (0, 0)))
        target = jnp.pad(target, (0, n_pad - n))
    target2d = target.astype(jnp.int32).reshape(n_pad, 1)
    grid = (n_pad // tile_n,)

    kernel = functools.partial(
        learner_kernel,
        num_samples=num_samples,
        kl_weight=float(kl_weight),
        batch_size=n,
        tile_n=tile_n,
    )

    out = pl.pallas_call(
        kernel,
        out_shape=jax.ShapeDtypeStruct((1, 2), jnp.float32),
        grid=grid,
        in_specs=[
            pl.BlockSpec((tile_n, c), lambda i: (i, 0)),   # logits tile (VMEM)
            pl.BlockSpec((tile_n, 1), lambda i: (i, 0)),   # target tile (VMEM)
            pl.BlockSpec((k, d), lambda i: (0, 0)),        # log_alpha, resident
        ],
        out_specs=pl.BlockSpec((1, 2), lambda i: (0, 0),
                               memory_space=pltpu.SMEM),
        scratch_shapes=[pltpu.SMEM((1,), jnp.float32)],    # ce partial-sum acc
        compiler_params=pltpu.CompilerParams(
            dimension_semantics=("arbitrary",)),           # sequential reduction
    )(logits, target2d, log_alpha)
    return out[0, 0], out[0, 1]


def _reference(logits, target, log_alpha, *, num_samples, kl_weight=0.1):
    x = logits.astype(jnp.float32)
    lse = jax.scipy.special.logsumexp(x, axis=-1)
    sel = jnp.take_along_axis(x, target[:, None].astype(jnp.int32), axis=-1)[:, 0]
    ce = jnp.mean(lse - sel)
    la = log_alpha.astype(jnp.float32)
    k1, k2, k3 = 0.63576, 1.8732, 1.48695
    kl_el = k1 * jax.nn.sigmoid(k2 + k3 * la) - 0.5 * jax.nn.softplus(-la) - k1
    kl = -jnp.sum(kl_el) / num_samples
    return ce + kl_weight * kl, -ce - kl


if __name__ == "__main__":
    key = jax.random.PRNGKey(0)
    k_logits, k_target, k_alpha = jax.random.split(key, 3)

    NUM_SAMPLES = 64

    # Small-shape check (single grid step): batch=8, classes=32, log_alpha 16x32.
    N, C = 8, 32
    K, D = 16, 32
    logits = jax.random.normal(k_logits, (N, C), dtype=jnp.float32)
    target = jax.random.randint(k_target, (N,), 0, C, dtype=jnp.int32)
    log_alpha = 0.1 * jax.random.normal(k_alpha, (K, D), dtype=jnp.float32) - 3.0

    loss, elbo = learner_forward(logits, target, log_alpha,
                                 num_samples=NUM_SAMPLES, kl_weight=0.1)
    jax.block_until_ready((loss, elbo))
    ref_loss, ref_elbo = _reference(logits, target, log_alpha,
                                    num_samples=NUM_SAMPLES, kl_weight=0.1)
    assert jnp.allclose(loss, ref_loss, rtol=1e-5, atol=1e-5), (loss, ref_loss)
    assert jnp.allclose(elbo, ref_elbo, rtol=1e-5, atol=1e-5), (elbo, ref_elbo)

    # Multi-tile check (grid > 1, padded + masked batch): batch=300.
    N2 = 300
    logits2 = jax.random.normal(k_logits, (N2, C), dtype=jnp.float32)
    target2 = jax.random.randint(k_target, (N2,), 0, C, dtype=jnp.int32)
    loss2, elbo2 = learner_forward(logits2, target2, log_alpha,
                                   num_samples=NUM_SAMPLES, kl_weight=0.1)
    jax.block_until_ready((loss2, elbo2))
    ref_loss2, ref_elbo2 = _reference(logits2, target2, log_alpha,
                                      num_samples=NUM_SAMPLES, kl_weight=0.1)
    assert jnp.allclose(loss2, ref_loss2, rtol=1e-5, atol=1e-5), (loss2, ref_loss2)
    assert jnp.allclose(elbo2, ref_elbo2, rtol=1e-5, atol=1e-5), (elbo2, ref_elbo2)

    print("KERNEL_OK")
</pallas_src>

<mosaic_0001>
module attributes {stable_mosaic.version = 11 : i64} {
  func.func @learner_kernel(%arg0: i32, %arg1: memref<8x32xf32, #tpu.memory_space<vmem>>, %arg2: memref<8x1xi32, #tpu.memory_space<vmem>>, %arg3: memref<16x32xf32, #tpu.memory_space<vmem>>, %arg4: memref<1x2xf32, #tpu.memory_space<smem>>, %arg5: memref<1xf32, #tpu.memory_space<smem>>) attributes {dimension_semantics = [#tpu.dimension_semantics<arbitrary>], iteration_bounds = array<i64: 1>, scalar_prefetch = 0 : i64, scratch_operands = 1 : i64, tpu.core_type = #tpu.core_type<tc>, window_params = [{transform_indices = @transform_0, window_bounds = array<i64: 8, 32>}, {transform_indices = @transform_1, window_bounds = array<i64: 8, 1>}, {pipeline_mode = #tpu.pipeline_mode<synchronous>, transform_indices = @transform_2, window_bounds = array<i64: 16, 32>}, {transform_indices = @transform_3, window_bounds = array<i64: 1, 2>}]} {
    %c0_i32 = arith.constant 0 : i32
    %0 = arith.cmpi eq, %arg0, %c0_i32 : i32
    %1 = arith.extui %0 : i1 to i32
    %c0_i32_0 = arith.constant 0 : i32
    %2 = arith.cmpi ne, %1, %c0_i32_0 : i32
    scf.if %2 {
      %cst_14 = arith.constant 0.000000e+00 : f32
      %c0_15 = arith.constant 0 : index
      %40 = memref.load %arg5[%c0_15] : memref<1xf32, #tpu.memory_space<smem>>
      memref.store %cst_14, %arg5[%c0_15] : memref<1xf32, #tpu.memory_space<smem>>
    } else {
    }
    %c0 = arith.constant 0 : index
    %c0_1 = arith.constant 0 : index
    %3 = vector.load %arg1[%c0, %c0_1] : memref<8x32xf32, #tpu.memory_space<vmem>>, vector<8x32xf32>
    %c0_2 = arith.constant 0 : index
    %c0_3 = arith.constant 0 : index
    %4 = vector.load %arg2[%c0_2, %c0_3] : memref<8x1xi32, #tpu.memory_space<vmem>>, vector<8x1xi32>
    %cst = arith.constant dense<0xFF800000> : vector<8xf32>
    %5 = vector.multi_reduction <maximumf>, %3, %cst [1] : vector<8x32xf32> to vector<8xf32>
    %6 = vector.shape_cast %5 : vector<8xf32> to vector<8x1xf32>
    %7 = vector.broadcast %6 : vector<8x1xf32> to vector<8x32xf32>
    %8 = arith.subf %3, %7 : vector<8x32xf32>
    %9 = math.exp %8 : vector<8x32xf32>
    %cst_4 = arith.constant dense<0.000000e+00> : vector<8xf32>
    %10 = vector.multi_reduction <add>, %9, %cst_4 [1] : vector<8x32xf32> to vector<8xf32>
    %11 = vector.shape_cast %10 : vector<8xf32> to vector<8x1xf32>
    %12 = math.log %11 : vector<8x1xf32>
    %13 = arith.addf %6, %12 : vector<8x1xf32>
    %14 = tpu.iota {dimensions = array<i32: 1>} : vector<8x32xi32>
    %15 = vector.broadcast %4 : vector<8x1xi32> to vector<8x32xi32>
    %16 = arith.cmpi eq, %14, %15 : vector<8x32xi32>
    %cst_5 = arith.constant 0.000000e+00 : f32
    %17 = vector.broadcast %cst_5 : f32 to vector<8x32xf32>
    %18 = arith.select %16, %3, %17 : vector<8x32xi1>, vector<8x32xf32>
    %cst_6 = arith.constant dense<0.000000e+00> : vector<8xf32>
    %19 = vector.multi_reduction <add>, %18, %cst_6 [1] : vector<8x32xf32> to vector<8xf32>
    %20 = vector.shape_cast %19 : vector<8xf32> to vector<8x1xf32>
    %21 = tpu.iota {dimensions = array<i32: 0>} : vector<8x1xi32>
    %c8_i32 = arith.constant 8 : i32
    %22 = arith.muli %arg0, %c8_i32 : i32
    %23 = vector.broadcast %22 : i32 to vector<8x1xi32>
    %24 = arith.addi %21, %23 : vector<8x1xi32>
    %c8_i32_7 = arith.constant 8 : i32
    %25 = vector.broadcast %c8_i32_7 : i32 to vector<8x1xi32>
    %26 = arith.cmpi slt, %24, %25 : vector<8x1xi32>
    %27 = arith.subf %13, %20 : vector<8x1xf32>
    %cst_8 = arith.constant 0.000000e+00 : f32
    %28 = vector.broadcast %cst_8 : f32 to vector<8x1xf32>
    %29 = arith.select %26, %27, %28 : vector<8x1xi1>, vector<8x1xf32>
    %c0_9 = arith.constant 0 : index
    %30 = memref.load %arg5[%c0_9] : memref<1xf32, #tpu.memory_space<smem>>
    %31 = vector.shape_cast %29 : vector<8x1xf32> to vector<1x8x1xf32>
    %cst_10 = arith.constant dense<0.000000e+00> : vector<1xf32>
    %32 = vector.multi_reduction <add>, %31, %cst_10 [1, 2] : vector<1x8x1xf32> to vector<1xf32>
    %33 = vector.shape_cast %32 : vector<1xf32> to vector<1x1x1xf32>
    %34 = vector.extract %33[0, 0, 0] : f32 from vector<1x1x1xf32>
    %35 = arith.addf %30, %34 : f32
    %c0_11 = arith.constant 0 : index
    %36 = memref.load %arg5[%c0_11] : memref<1xf32, #tpu.memory_space<smem>>
    memref.store %35, %arg5[%c0_11] : memref<1xf32, #tpu.memory_space<smem>>
    %c0_i32_12 = arith.constant 0 : i32
    %37 = arith.cmpi eq, %arg0, %c0_i32_12 : i32
    %38 = arith.extui %37 : i1 to i32
    %c0_i32_13 = arith.constant 0 : i32
    %39 = arith.cmpi ne, %38, %c0_i32_13 : i32
    scf.if %39 {
      %c0_14 = arith.constant 0 : index
      %40 = memref.load %arg5[%c0_14] : memref<1xf32, #tpu.memory_space<smem>>
      %cst_15 = arith.constant 8.000000e+00 : f32
      %41 = arith.divf %40, %cst_15 : f32
      %c0_16 = arith.constant 0 : index
      %c0_17 = arith.constant 0 : index
      %42 = vector.load %arg3[%c0_16, %c0_17] : memref<16x32xf32, #tpu.memory_space<vmem>>, vector<16x32xf32>
      %cst_18 = arith.constant 1.486950e+00 : f32
      %43 = vector.broadcast %cst_18 : f32 to vector<16x32xf32>
      %44 = arith.mulf %43, %42 : vector<16x32xf32>
      %cst_19 = arith.constant 1.873200e+00 : f32
      %45 = vector.broadcast %cst_19 : f32 to vector<16x32xf32>
      %46 = arith.addf %45, %44 : vector<16x32xf32>
      %47 = arith.negf %46 : vector<16x32xf32>
      %48 = math.exp %47 : vector<16x32xf32>
      %cst_20 = arith.constant 1.000000e+00 : f32
      %49 = vector.broadcast %cst_20 : f32 to vector<16x32xf32>
      %50 = arith.addf %49, %48 : vector<16x32xf32>
      %51 = arith.divf %49, %50 : vector<16x32xf32>
      %cst_21 = arith.constant 6.357600e-01 : f32
      %52 = vector.broadcast %cst_21 : f32 to vector<16x32xf32>
      %53 = arith.mulf %52, %51 : vector<16x32xf32>
      %cst_22 = arith.constant 0.000000e+00 : f32
      %54 = vector.broadcast %cst_22 : f32 to vector<16x32xf32>
      %55 = arith.subf %54, %42 : vector<16x32xf32>
      %cst_23 = arith.constant 0.000000e+00 : f32
      %56 = vector.broadcast %cst_23 : f32 to vector<16x32xf32>
      %57 = arith.maximumf %55, %56 : vector<16x32xf32>
      %58 = vector.broadcast %cst_23 : f32 to vector<16x32xf32>
      %59 = arith.subf %55, %58 : vector<16x32xf32>
      %60 = arith.cmpf one, %59, %59 : vector<16x32xf32>
      %61 = vector.broadcast %cst_23 : f32 to vector<16x32xf32>
      %62 = arith.addf %55, %61 : vector<16x32xf32>
      %63 = math.absf %59 : vector<16x32xf32>
      %cst_24 = arith.constant 0.000000e+00 : f32
      %64 = vector.broadcast %cst_24 : f32 to vector<16x32xf32>
      %65 = arith.subf %64, %63 : vector<16x32xf32>
      %66 = math.exp %65 : vector<16x32xf32>
      %67 = math.log1p %66 : vector<16x32xf32>
      %68 = arith.addf %57, %67 : vector<16x32xf32>
      %69 = arith.select %60, %62, %68 : vector<16x32xi1>, vector<16x32xf32>
      %cst_25 = arith.constant 5.000000e-01 : f32
      %70 = vector.broadcast %cst_25 : f32 to vector<16x32xf32>
      %71 = arith.mulf %70, %69 : vector<16x32xf32>
      %72 = arith.subf %53, %71 : vector<16x32xf32>
      %cst_26 = arith.constant 6.357600e-01 : f32
      %73 = vector.broadcast %cst_26 : f32 to vector<16x32xf32>
      %74 = arith.subf %72, %73 : vector<16x32xf32>
      %75 = vector.shape_cast %74 : vector<16x32xf32> to vector<1x16x32xf32>
      %cst_27 = arith.constant dense<0.000000e+00> : vector<1xf32>
      %76 = vector.multi_reduction <add>, %75, %cst_27 [1, 2] : vector<1x16x32xf32> to vector<1xf32>
      %77 = vector.shape_cast %76 : vector<1xf32> to vector<1x1x1xf32>
      %78 = vector.extract %77[0, 0, 0] : f32 from vector<1x1x1xf32>
      %cst_28 = arith.constant 0.000000e+00 : f32
      %79 = arith.subf %cst_28, %78 : f32
      %cst_29 = arith.constant 6.400000e+01 : f32
      %80 = arith.divf %79, %cst_29 : f32
      %cst_30 = arith.constant 1.000000e-01 : f32
      %81 = arith.mulf %cst_30, %80 : f32
      %82 = arith.addf %41, %81 : f32
      %c0_31 = arith.constant 0 : index
      %c0_32 = arith.constant 0 : index
      %83 = memref.load %arg4[%c0_31, %c0_32] : memref<1x2xf32, #tpu.memory_space<smem>>
      memref.store %82, %arg4[%c0_31, %c0_32] : memref<1x2xf32, #tpu.memory_space<smem>>
      %cst_33 = arith.constant 0.000000e+00 : f32
      %84 = arith.subf %cst_33, %41 : f32
      %85 = arith.subf %84, %80 : f32
      %c0_34 = arith.constant 0 : index
      %c1 = arith.constant 1 : index
      %86 = memref.load %arg4[%c0_34, %c1] : memref<1x2xf32, #tpu.memory_space<smem>>
      memref.store %85, %arg4[%c0_34, %c1] : memref<1x2xf32, #tpu.memory_space<smem>>
    } else {
    }
    return
  }
  func.func @transform_0(%arg0: i32) -> (i32, i32) {
    %c0_i32 = arith.constant 0 : i32
    %c0_i32_0 = arith.constant 0 : i32
    return %arg0, %c0_i32 : i32, i32
  }
  func.func @transform_1(%arg0: i32) -> (i32, i32) {
    %c0_i32 = arith.constant 0 : i32
    %c0_i32_0 = arith.constant 0 : i32
    return %arg0, %c0_i32 : i32, i32
  }
  func.func @transform_2(%arg0: i32) -> (i32, i32) {
    %c0_i32 = arith.constant 0 : i32
    %c0_i32_0 = arith.constant 0 : i32
    %c0_i32_1 = arith.constant 0 : i32
    return %c0_i32, %c0_i32_0 : i32, i32
  }
  func.func @transform_3(%arg0: i32) -> (i32, i32) {
    %c0_i32 = arith.constant 0 : i32
    %c0_i32_0 = arith.constant 0 : i32
    %c0_i32_1 = arith.constant 0 : i32
    return %c0_i32, %c0_i32_0 : i32, i32
  }
}

</mosaic_0001>

<bundles_post_ra>
// kernel: tpu_custom_call.1
= control target key start
LH: loop header
LB: loop body
LE: loop exit
PB: predicated region body
PF: predicated region fallthrough
CT: control target
= control target key end

     0   :  { %8 = vsyncpa [#allocation4], 0  ;;  %s304_s0 = inlined_call_operand.vmem [shape: f32[8,32], index: 0, kind: input, shape index: {}]   ;;  %s305_s1 = inlined_call_operand.vmem [shape: s32[8,1], index: 1, kind: input, shape index: {}]   ;;  %s306_s2 = inlined_call_operand.hbm [shape: f32[16,32], index: 2, kind: input, shape index: {}]   ;;  %s307_s3 = inlined_call_operand.hbm [shape: f32[1,2], index: 3, kind: output, shape index: {}]  }
   0x1   :  { %9 = vsyncpa [#allocation5], 0  ;;  %s258_s12 = smov [#allocation3]  }
   0x2   :  { %s19_s13 = sshll.u32 %s258_s12, 4  ;;  %s20_s13 = int_to_ptr.vmem [resolvable:$true] %s19_s13 }
   0x3   :  { %s234_s14 = scalar_lea.vmem %s20_s13, 256  ;;  %p239_p1 = scmp.lt.s32.totalorder %s20_s13, %s20_s13 }
   0x4   :  { %p235_p0 = scmp.ne.s32.totalorder %s20_s13, %s234_s14  ;;  %p240_p2 = scmp.lt.s32.totalorder %s234_s14, %s234_s14 }
   0x6   :  { %p241_p3 = por %p240_p2, %p239_p1 }
   0x8   :  { %p242_p4 = pnand %p241_p3, %p235_p0 }
   0xa   :  { %245 = shalt.err (!%p242_p4)
}
   0xb   :  { %s259_s15 = smov 128   ;;  %s260_s16 = smov 8  }
   0xc   :  { %25 = dma.hbm_to_vmem [thread:$0]  %s306_s2, 256, %s20_s13, [#allocation4], %s259_s15, %s259_s15, %s260_s16  }
   0xd   :  { %254 = dma.done.wait [#allocation4], 256  }
   0xe   :  { %255 = vsyncadd [#allocation4], 4294967040  ;;  %v261_v0 = vmov 0   ;;  %vm37_vm0 = vcmask 261120   ;;  %v35_v1 = vld [vmem:[%s304_s0] sm:$0xff]  ;;  %v50_v7 = vlaneseq  ;;  %v91_v15 = vld [vmem:[#allocation3 + $0x8] sm:$0xff] }
   0xf   :  { %205 = vset.pattern.permute.xlu0 %v261_v0  ;;  %v38_v2 = vsel %vm37_vm0, %v35_v1, -inf  ;;  %v36_v3 = vld [vmem:[%s305_s1] sm:$0xff]  ;;  %v111_v17 = vsub.f32 0.0, %v91_v15  ;;  %v93_v25 = vmul.f32 1.48695, %v91_v15  ;;  %vm69_vm6 = vcmask 7168  }
  0x10   :  { %39 = vmax.xlane.f32.xlu0 %v38_v2  ;;  %v51_v8 = vand.u32 127, %v50_v7  ;;  %v90_v14 = vld [vmem:[#allocation3] sm:$0xff]  ;;  %s262_s29 = smov [#allocation6]  }
  0x11   :  { %v110_v16 = vsub.f32 0.0, %v90_v14  ;;  %v119_v19 = vand.u32 2147483647, %v111_v17  ;;  %v92_v24 = vmul.f32 1.48695, %v90_v14  ;;  %v113_v51 = vmax.f32 %v111_v17, 0.0 }
  0x12   :  { %v95_v27 = vadd.f32 1.8732, %v93_v25  ;;  %vm115_vm5 = vcmp.ne.f32.partialorder %v111_v17, %v111_v17 }
  0x13   :  { %v118_v18 = vand.u32 2147483647, %v110_v16  ;;  %v121_v21 = vsub.f32 0.0, %v119_v19  ;;  %v94_v26 = vadd.f32 1.8732, %v92_v24  ;;  %v112_v50 = vmax.f32 %v110_v16, 0.0 }
  0x14   :  { %v193_v29 = vmul.f32 -1.442695, %v95_v27  ;;  %vm114_vm4 = vcmp.ne.f32.partialorder %v110_v16, %v110_v16 }
  0x15   :  { %v120_v20 = vsub.f32 0.0, %v118_v18  ;;  %v124_v23 = vmul.f32 1.442695, %v121_v21  ;;  %v192_v28 = vmul.f32 -1.442695, %v94_v26 }
  0x17   :  { %v122_v22 = vmul.f32 1.442695, %v120_v20 }
  0x26   :  { %53 = vperm.xlu0 %205, %v36_v3  }
  0x99   :  { %v293_v4 = vpop.xlane.xlu0 %39 }
  0x9a   :  { %v41_v5 = vsub.f32 %v35_v1, %v293_v4 }
  0x9c   :  { %v42_v6 = vmul.f32 1.442695, %v41_v5 }
  0x9e   :  { %206 = vpow2.f32 %v42_v6 }
  0x9f   :  { %208 = vpow2.f32 %v122_v22 }
  0xa0   :  { %210 = vpow2.f32 %v124_v23 }
  0xa1   :  { %v54_v9 = vpop.permute.xlu0 %53  ;;  %212 = vpow2.f32 %v192_v28 }
  0xa2   :  { %vm55_vm1 = vcmp.eq.s32.totalorder %v51_v8, %v54_v9  ;;  %214 = vpow2.f32 %v193_v29 }
  0xa3   :  { %v56_v11 = vsel %vm55_vm1, %v35_v1, 0.0 }
  0xa4   :  { %v57_v13 = vsel %vm37_vm0, %v56_v11, 0.0 }
  0xab   :  { %v207_v10 = vpop.eup %206 }
  0xac   :  { %v44_v12 = vsel %vm37_vm0, %v207_v10, 0.0  ;;  %v209_v30 = vpop.eup %208 }
  0xad   :  { %45 = vadd.xlane.f32.xlu1 %v44_v12  ;;  %v211_v31 = vpop.eup %210  ;;  %v126_v32 = vadd.f32 1.0, %v209_v30  ;;  %v129_v36 = vmul.f32 -0.5, %v209_v30  ;;  %v132_v44 = vand.u32 2147483647, %v209_v30 }
  0xae   :  { %v135_v33 = vadd.f32 1.0, %v211_v31  ;;  %v213_v34 = vpop.eup %212  ;;  %v138_v37 = vmul.f32 -0.5, %v211_v31  ;;  %v141_v45 = vand.u32 2147483647, %v211_v31 }
  0xaf   :  { %216 = vlog2.f32 %v126_v32  ;;  %v215_v35 = vpop.eup %214  ;;  %v102_v38 = vadd.f32 1.0, %v213_v34  ;;  %v130_v41 = vadd.f32 1.0, %v129_v36  ;;  %vm133_vm2 = vcmp.lt.f32.partialorder %v132_v44, 0.0004427343 }
  0xb0   :  { %218 = vlog2.f32 %v135_v33  ;;  %v103_v39 = vadd.f32 1.0, %v215_v35  ;;  %v139_v42 = vadd.f32 1.0, %v138_v37  ;;  %vm142_vm3 = vcmp.lt.f32.partialorder %v141_v45, 0.0004427343 }
  0xb1   :  { %58 = vadd.xlane.f32.xlu1 %v57_v13  ;;  %220 = vrcp.f32 %v102_v38  ;;  %v131_v47 = vmul.f32 %v209_v30, %v130_v41 }
  0xb2   :  { %222 = vrcp.f32 %v103_v39  ;;  %v140_v49 = vmul.f32 %v211_v31, %v139_v42 }
  0xbc   :  { %v217_v40 = vpop.eup %216 }
  0xbd   :  { %v219_v43 = vpop.eup %218  ;;  %v128_v46 = vmul.f32 0.6931472, %v217_v40 }
  0xbe   :  { %v137_v48 = vmul.f32 0.6931472, %v219_v43  ;;  %v221_v57 = vpop.eup %220 }
  0xbf   :  { %v134_v52 = vsel %vm133_vm2, %v131_v47, %v128_v46  ;;  %v223_v58 = vpop.eup %222  ;;  %v108_v61 = vmul.f32 0.63576, %v221_v57 }
  0xc0   :  { %v143_v53 = vsel %vm142_vm3, %v140_v49, %v137_v48  ;;  %v144_v55 = vadd.f32 %v134_v52, %v112_v50  ;;  %v109_v62 = vmul.f32 0.63576, %v223_v58 }
  0xc1   :  { %v145_v56 = vadd.f32 %v143_v53, %v113_v51 }
  0xc2   :  { %v146_v59 = vsel %vm114_vm4, %v110_v16, %v144_v55 }
  0xc3   :  { %v147_v60 = vsel %vm115_vm5, %v111_v17, %v145_v56  ;;  %v148_v63 = vmul.f32 0.5, %v146_v59 }
  0xc4   :  { %v149_v0 = vmul.f32 0.5, %v147_v60 }
  0xc5   :  { %v150_v1 = vsub.f32 %v108_v61, %v148_v63 }
  0xc6   :  { %v151_v2 = vsub.f32 %v109_v62, %v149_v0 }
  0xc7   :  { %v194_v6 = vadd.f32 -0.63576, %v150_v1 }
  0xc8   :  { %v195_v7 = vadd.f32 -0.63576, %v151_v2 }
  0xc9   :  { %v154_v11 = vsel %vm37_vm0, %v194_v6, 0.0 }
  0xca   :  { %v155_v12 = vsel %vm37_vm0, %v195_v7, 0.0 }
  0xcb   :  { %v156_v14 = vadd.f32 %v155_v12, %v154_v11 }
 0x136   :  { %v46_v54 = vpop.xlane.xlu1 %45 }
 0x137   :  { %224 = vlog2.f32 %v46_v54 }
 0x13a   :  { %v59_v8 = vpop.xlane.xlu1 %58 }
 0x144   :  { %v225_v3 = vpop.eup %224 }
 0x145   :  { %v48_v5 = vmul.f32 0.6931472, %v225_v3 }
 0x147   :  { %v49_v9 = vadd.f32 %v48_v5, %v293_v4 }
 0x149   :  { %v66_v10 = vsub.f32 %v49_v9, %v59_v8 }
 0x14b   :  { %v70_v13 = vsel %vm69_vm6, %v66_v10, 0.0 }
 0x14c   :  { %71 = vadd.xlane.f32.xlu1 %v70_v13 }
 0x150   :  { %157 = vadd.xlane.f32.xlu1 %v156_v14 }
 0x1d5   :  { %v72_v15 = vpop.xlane.xlu1 %71 }
 0x1d6   :  { %v73_v16 = vrot.slane %v72_v15, 4 }
 0x1d8   :  { %v74_v17 = vadd.f32 %v73_v16, %v72_v15 }
 0x1d9   :  { %v158_v18 = vpop.xlane.xlu1 %157 }
 0x1da   :  { %v75_v19 = vrot.slane %v74_v17, 2  ;;  %v159_v20 = vrot.slane %v158_v18, 4 }
 0x1dc   :  { %v160_v21 = vadd.f32 %v159_v20, %v158_v18  ;;  %v76_v22 = vadd.f32 %v75_v19, %v74_v17 }
 0x1de   :  { %v161_v23 = vrot.slane %v160_v21, 2  ;;  %v77_v4 = vrot.slane %v76_v22, 1 }
 0x1e0   :  { %v162_v24 = vadd.f32 %v161_v23, %v160_v21  ;;  %v78_v25 = vadd.f32 %v77_v4, %v76_v22 }
 0x1e2   :  { %196 = vpush %v78_v25  ;;  %v163_v26 = vrot.slane %v162_v24, 1 }
 0x1e4   :  { %v164_v27 = vadd.f32 %v163_v26, %v162_v24 }
 0x1e6   :  { %198 = vpush %v164_v27 }
 0x213   :  { %s197_s0 = spop %196 }
 0x214   :  { %s89_s1 = smul.f32 0.125, %s197_s0 }
 0x216   :  { %s174_s24 = ssub.f32 0.0, %s89_s1 }
 0x217   :  { %s199_s2 = spop %198 }
 0x218   :  { %s166_s23 = ssub.f32 0.0, %s199_s2 }
 0x21a   :  { %s169_s25 = smul.f32 0.015625, %s166_s23 }
 0x21c   :  { %s170_s26 = smul.f32 0.1, %s169_s25  ;;  %s175_s27 = ssub.f32 %s174_s24, %s169_s25 }
 0x21e   :  { %s171_s28 = sadd.f32 %s170_s26, %s89_s1 }
 0x21f   :  { %177 = sst [smem:[#allocation6 + $0x1]] %s175_s27 }
 0x220   :  { %173 = sst [smem:[#allocation6]] %s171_s28 }
 0x221   :  { %185 = dma.smem_to_hbm %s262_s29, 16, %s307_s3, [#allocation5]  }
 0x222   :  { %256 = dma.done.wait [#allocation5], 16  }
 0x223   :  { %257 = vsyncadd [#allocation5], 4294967280 }
 0x224   :  { %189 = sfence }
 0x225   :  { %190 = vsyncpa [#allocation4], 1 }
 0x226   :  { %191 = vsyncpa [#allocation5], 1 }

</bundles_post_ra>
